<compile_context>
chip_gen: v5e
topology: v5e:2x2
jax: 0.10.0
libtpu: 0.0.40
codegen_flags: <defaults>
</compile_context>

<pallas_src>
import jax
import jax.numpy as jnp
from jax.experimental import pallas as pl
from jax.experimental.pallas import tpu as pltpu

HIDDEN = 64          # fixed by the PyTorch module
HP = 128             # padded hidden (lane-dense, one clean MXU tile)
AP = 128             # padded action dim (lane-dense output stores)
NEG_BIG = -1e30      # bias for padded action columns -> exp() underflows to 0


def policy_net_kernel(x_ref, w1_ref, b1_ref, w2_ref, b2_ref, out_ref):
    # x: (TB, S) bf16, w1: (S, HP) bf16, b1: (1, HP) f32,
    # w2: (HP, AP) bf16, b2: (1, AP) f32, out: (TB, AP) f32
    x = x_ref[...]

    # Layer 1: Linear (bf16 MXU, f32 accumulate) + tanh (f32 EUP/VPU)
    h = jnp.dot(x, w1_ref[...], preferred_element_type=jnp.float32) + b1_ref[...]
    h = jnp.tanh(h)

    # Layer 2: Linear (bf16 MXU, f32 accumulate)
    logits = (
        jnp.dot(h.astype(jnp.bfloat16), w2_ref[...],
                preferred_element_type=jnp.float32)
        + b2_ref[...]
    )

    # Numerically stable softmax over the (padded) action lanes.
    m = jnp.max(logits, axis=-1, keepdims=True)
    e = jnp.exp(logits - m)                    # pads: exp(-1e30 - m) == 0
    denom = jnp.sum(e, axis=-1, keepdims=True)
    out_ref[...] = (e * pl.reciprocal(denom, approx=True)).astype(out_ref.dtype)


def _round_up(x, m):
    return (x + m - 1) // m * m


def policy_network_forward(obs, w1, b1, w2, b2, *, batch_tile=512):
    """obs: (B, S) f32.  w1: (S, 64), b1: (64,), w2: (64, A), b2: (A,)
    (weights stored (in, out), i.e. transposed vs. PyTorch's (out, in)).
    Returns (B, A) f32 action probabilities."""
    B, S = obs.shape
    H = w1.shape[1]
    A = w2.shape[1]
    assert H == HIDDEN and H <= HP and A <= AP

    # ---- pad parameters to lane-dense shapes (done once per call; cheap) ----
    w1p = jnp.zeros((S, HP), jnp.bfloat16).at[:, :H].set(w1.astype(jnp.bfloat16))
    b1p = jnp.zeros((1, HP), jnp.float32).at[:, :H].set(
        b1.reshape(1, H).astype(jnp.float32))
    w2p = jnp.zeros((HP, AP), jnp.bfloat16).at[:H, :A].set(w2.astype(jnp.bfloat16))
    b2p = jnp.full((1, AP), NEG_BIG, jnp.float32).at[:, :A].set(
        b2.reshape(1, A).astype(jnp.float32))

    # ---- tile the batch over the grid (bf16 obs -> 16-row minimum tile) ----
    TB = batch_tile if B >= batch_tile else _round_up(B, 16)
    Bp = _round_up(B, TB)
    obs_p = jnp.zeros((Bp, S), jnp.bfloat16).at[:B, :].set(obs.astype(jnp.bfloat16))
    n_tiles = Bp // TB

    cost = pl.CostEstimate(
        flops=2 * Bp * (S * HP + HP * AP),
        transcendentals=Bp * (HP + AP),
        bytes_accessed=(Bp * S * 2                      # obs (bf16)
                        + S * HP * 2 + HP * 4           # w1, b1
                        + HP * AP * 2 + AP * 4          # w2, b2
                        + Bp * AP * 4),                 # out (f32)
    )

    out_full = pl.pallas_call(
        policy_net_kernel,
        out_shape=jax.ShapeDtypeStruct((Bp, AP), jnp.float32),
        grid=(n_tiles,),
        in_specs=[
            pl.BlockSpec((TB, S), lambda i: (i, 0)),    # obs: streamed per tile
            pl.BlockSpec((S, HP), lambda i: (0, 0)),    # weights stay resident
            pl.BlockSpec((1, HP), lambda i: (0, 0)),
            pl.BlockSpec((HP, AP), lambda i: (0, 0)),
            pl.BlockSpec((1, AP), lambda i: (0, 0)),
        ],
        out_specs=pl.BlockSpec((TB, AP), lambda i: (i, 0)),
        compiler_params=pltpu.CompilerParams(
            dimension_semantics=("parallel",),          # v7x: shard over both TCs
        ),
        cost_estimate=cost,
    )(obs_p, w1p, b1p, w2p, b2p)

    return out_full[:B, :A]


def init_params(key, space_n, action_n):
    """PyTorch-Linear-style init (uniform +/- 1/sqrt(fan_in)); weights (in, out)."""
    k1, k2, k3, k4 = jax.random.split(key, 4)
    bound1 = 1.0 / jnp.sqrt(space_n)
    bound2 = 1.0 / jnp.sqrt(HIDDEN)
    w1 = jax.random.uniform(k1, (space_n, HIDDEN), jnp.float32, -bound1, bound1)
    b1 = jax.random.uniform(k2, (HIDDEN,), jnp.float32, -bound1, bound1)
    w2 = jax.random.uniform(k3, (HIDDEN, action_n), jnp.float32, -bound2, bound2)
    b2 = jax.random.uniform(k4, (action_n,), jnp.float32, -bound2, bound2)
    return w1, b1, w2, b2


def _reference(obs, w1, b1, w2, b2):
    h = jnp.tanh(obs @ w1 + b1)
    return jax.nn.softmax(h @ w2 + b2, axis=-1)


if __name__ == "__main__":
    key = jax.random.PRNGKey(0)
    k_obs, k_obs_big, k_params = jax.random.split(key, 3)

    space_n = 8      # observation dim
    action_n = 4     # number of actions
    batch = 2        # small demo batch (matches a couple of env steps)

    w1, b1, w2, b2 = init_params(k_params, space_n, action_n)

    # --- small-batch run (module-sized) ---
    obs = jax.random.normal(k_obs, (batch, space_n), dtype=jnp.float32)
    probs = policy_network_forward(obs, w1, b1, w2, b2)
    probs = jax.block_until_ready(probs)

    ref = _reference(obs, w1, b1, w2, b2)
    assert probs.shape == (batch, action_n)
    assert jnp.allclose(probs, ref, atol=3e-2), "mismatch vs reference (small B)"
    assert jnp.allclose(jnp.sum(probs, axis=-1), 1.0, atol=1e-2), "probs != 1 (small B)"

    # --- larger batch to exercise the batch-tiled grid path ---
    big_batch = 1024
    obs_big = jax.random.normal(k_obs_big, (big_batch, space_n), dtype=jnp.float32)
    probs_big = jax.block_until_ready(
        policy_network_forward(obs_big, w1, b1, w2, b2, batch_tile=512))
    ref_big = _reference(obs_big, w1, b1, w2, b2)
    assert probs_big.shape == (big_batch, action_n)
    assert jnp.allclose(probs_big, ref_big, atol=3e-2), "mismatch vs reference (big B)"
    assert jnp.allclose(jnp.sum(probs_big, axis=-1), 1.0, atol=1e-2), "probs != 1 (big B)"

    print("KERNEL_OK")
</pallas_src>

<mosaic_0001>
module attributes {stable_mosaic.version = 11 : i64} {
  func.func @policy_net_kernel(%arg0: i32, %arg1: memref<16x8xbf16, #tpu.memory_space<vmem>>, %arg2: memref<8x128xbf16, #tpu.memory_space<vmem>>, %arg3: memref<1x128xf32, #tpu.memory_space<vmem>>, %arg4: memref<128x128xbf16, #tpu.memory_space<vmem>>, %arg5: memref<1x128xf32, #tpu.memory_space<vmem>>, %arg6: memref<16x128xf32, #tpu.memory_space<vmem>>) attributes {dimension_semantics = [#tpu.dimension_semantics<parallel>], iteration_bounds = array<i64: 1>, scalar_prefetch = 0 : i64, scratch_operands = 0 : i64, tpu.core_type = #tpu.core_type<tc>, window_params = [{transform_indices = @transform_0, window_bounds = array<i64: 16, 8>}, {pipeline_mode = #tpu.pipeline_mode<synchronous>, transform_indices = @transform_1, window_bounds = array<i64: 8, 128>}, {pipeline_mode = #tpu.pipeline_mode<synchronous>, transform_indices = @transform_2, window_bounds = array<i64: 1, 128>}, {pipeline_mode = #tpu.pipeline_mode<synchronous>, transform_indices = @transform_3, window_bounds = array<i64: 128, 128>}, {pipeline_mode = #tpu.pipeline_mode<synchronous>, transform_indices = @transform_4, window_bounds = array<i64: 1, 128>}, {transform_indices = @transform_5, window_bounds = array<i64: 16, 128>}]} {
    %c0 = arith.constant 0 : index
    %c0_0 = arith.constant 0 : index
    %0 = vector.load %arg1[%c0, %c0_0] : memref<16x8xbf16, #tpu.memory_space<vmem>>, vector<16x8xbf16>
    %c0_1 = arith.constant 0 : index
    %c0_2 = arith.constant 0 : index
    %1 = vector.load %arg2[%c0_1, %c0_2] : memref<8x128xbf16, #tpu.memory_space<vmem>>, vector<8x128xbf16>
    %cst = arith.constant dense<0.000000e+00> : vector<16x128xf32>
    %2 = tpu.matmul %0, %1, %cst {dimension_numbers = #tpu.dot_dimension_numbers<[1], [0], [0], [1], [0, 0, 1, 1], [], []>} : vector<16x8xbf16>, vector<8x128xbf16>, vector<16x128xf32> -> vector<16x128xf32>
    %c0_3 = arith.constant 0 : index
    %c0_4 = arith.constant 0 : index
    %3 = vector.load %arg3[%c0_3, %c0_4] : memref<1x128xf32, #tpu.memory_space<vmem>>, vector<1x128xf32>
    %4 = vector.broadcast %3 : vector<1x128xf32> to vector<16x128xf32>
    %5 = arith.addf %2, %4 : vector<16x128xf32>
    %6 = math.tanh %5 : vector<16x128xf32>
    %7 = arith.truncf %6 : vector<16x128xf32> to vector<16x128xbf16>
    %c0_5 = arith.constant 0 : index
    %c0_6 = arith.constant 0 : index
    %8 = vector.load %arg4[%c0_5, %c0_6] : memref<128x128xbf16, #tpu.memory_space<vmem>>, vector<128x128xbf16>
    %cst_7 = arith.constant dense<0.000000e+00> : vector<16x128xf32>
    %9 = tpu.matmul %7, %8, %cst_7 {dimension_numbers = #tpu.dot_dimension_numbers<[1], [0], [0], [1], [0, 0, 1, 1], [], []>} : vector<16x128xbf16>, vector<128x128xbf16>, vector<16x128xf32> -> vector<16x128xf32>
    %c0_8 = arith.constant 0 : index
    %c0_9 = arith.constant 0 : index
    %10 = vector.load %arg5[%c0_8, %c0_9] : memref<1x128xf32, #tpu.memory_space<vmem>>, vector<1x128xf32>
    %11 = vector.broadcast %10 : vector<1x128xf32> to vector<16x128xf32>
    %12 = arith.addf %9, %11 : vector<16x128xf32>
    %cst_10 = arith.constant dense<0xFF800000> : vector<16xf32>
    %13 = vector.multi_reduction <maximumf>, %12, %cst_10 [1] : vector<16x128xf32> to vector<16xf32>
    %14 = vector.shape_cast %13 : vector<16xf32> to vector<16x1xf32>
    %15 = vector.broadcast %14 : vector<16x1xf32> to vector<16x128xf32>
    %16 = arith.subf %12, %15 : vector<16x128xf32>
    %17 = math.exp %16 : vector<16x128xf32>
    %cst_11 = arith.constant dense<0.000000e+00> : vector<16xf32>
    %18 = vector.multi_reduction <add>, %17, %cst_11 [1] : vector<16x128xf32> to vector<16xf32>
    %19 = vector.shape_cast %18 : vector<16xf32> to vector<16x1xf32>
    %20 = tpu.reciprocal %19 {approx = true} : vector<16x1xf32> -> vector<16x1xf32>
    %21 = vector.broadcast %20 : vector<16x1xf32> to vector<16x128xf32>
    %22 = arith.mulf %17, %21 : vector<16x128xf32>
    %c0_12 = arith.constant 0 : index
    %c0_13 = arith.constant 0 : index
    %23 = vector.load %arg6[%c0_12, %c0_13] : memref<16x128xf32, #tpu.memory_space<vmem>>, vector<16x128xf32>
    tpu.vector_store %arg6[%c0_12, %c0_13], %22 {strides = array<i32>} : memref<16x128xf32, #tpu.memory_space<vmem>>, vector<16x128xf32>,
    return
  }
  func.func @transform_0(%arg0: i32) -> (i32, i32) {
    %c0_i32 = arith.constant 0 : i32
    %c0_i32_0 = arith.constant 0 : i32
    return %arg0, %c0_i32 : i32, i32
  }
  func.func @transform_1(%arg0: i32) -> (i32, i32) {
    %c0_i32 = arith.constant 0 : i32
    %c0_i32_0 = arith.constant 0 : i32
    %c0_i32_1 = arith.constant 0 : i32
    return %c0_i32, %c0_i32_0 : i32, i32
  }
  func.func @transform_2(%arg0: i32) -> (i32, i32) {
    %c0_i32 = arith.constant 0 : i32
    %c0_i32_0 = arith.constant 0 : i32
    %c0_i32_1 = arith.constant 0 : i32
    return %c0_i32, %c0_i32_0 : i32, i32
  }
  func.func @transform_3(%arg0: i32) -> (i32, i32) {
    %c0_i32 = arith.constant 0 : i32
    %c0_i32_0 = arith.constant 0 : i32
    %c0_i32_1 = arith.constant 0 : i32
    return %c0_i32, %c0_i32_0 : i32, i32
  }
  func.func @transform_4(%arg0: i32) -> (i32, i32) {
    %c0_i32 = arith.constant 0 : i32
    %c0_i32_0 = arith.constant 0 : i32
    %c0_i32_1 = arith.constant 0 : i32
    return %c0_i32, %c0_i32_0 : i32, i32
  }
  func.func @transform_5(%arg0: i32) -> (i32, i32) {
    %c0_i32 = arith.constant 0 : i32
    %c0_i32_0 = arith.constant 0 : i32
    return %arg0, %c0_i32 : i32, i32
  }
}

</mosaic_0001>

<bundles_post_ra>
// kernel: tpu_custom_call.1
= control target key start
LH: loop header
LB: loop body
LE: loop exit
PB: predicated region body
PF: predicated region fallthrough
CT: control target
= control target key end

     0   :  { %10 = vsyncpa [#allocation3], 0  ;;  %s368_s0 = inlined_call_operand.vmem [shape: bf16[16,8], index: 0, kind: input, shape index: {}]   ;;  %s369_s1 = inlined_call_operand.vmem [shape: bf16[8,128], index: 1, kind: input, shape index: {}]   ;;  %s370_s2 = inlined_call_operand.vmem [shape: f32[1,128], index: 2, kind: input, shape index: {}]   ;;  %s371_s3 = inlined_call_operand.hbm [shape: bf16[128,128], index: 3, kind: input, shape index: {}]   ;;  %s372_s4 = inlined_call_operand.vmem [shape: f32[1,128], index: 4, kind: input, shape index: {}]   ;;  %s373_s5 = inlined_call_operand.hbm [shape: f32[16,128], index: 5, kind: output, shape index: {}]  }
   0x1   :  { %11 = vsyncpa [#allocation4], 0  ;;  %s22_s20 = sshll.u32 %s371_s3, 4  ;;  %s314_s21 = smov [#allocation2]   ;;  %s23_s20 = int_to_ptr.hbm [resolvable:$true] %s22_s20 }
   0x2   :  { %s24_s22 = sshll.u32 %s314_s21, 4  ;;  %s315_s23 = smov 64   ;;  %s25_s22 = int_to_ptr.vmem [resolvable:$true] %s24_s22 }
   0x3   :  { %s316_s24 = smov 4  }
   0x4   :  { %30 = dma.hbm_to_vmem [thread:$0]  %s23_s20, 1024, %s25_s22, [#allocation3], %s315_s23, %s315_s23, %s316_s24  }
   0x5   :  { %310 = dma.done.wait [#allocation3], 1024  }
   0x6   :  { %311 = vsyncadd [#allocation3], 4294966272  ;;  %vm54_vm0 = vcmask 1043456   ;;  %v40_v0 = vld [vmem:[%s369_s1] sm:$0xf]  ;;  %v241_v1 = vld [vmem:[#allocation2 + $0x38] sm:$0xff] }
   0x7   :  { %v56_v2 = vsel %vm54_vm0, %v40_v0, 0  ;;  %v233_v3 = vld [vmem:[%s368_s0] sm:$0xff]  ;;  %vm50_vm1 = vcmask 64512   ;;  %143 = vmatpush.bf16.msra.mxu1 %v241_v1  ;;  %v240_v4 = vld [vmem:[#allocation2 + $0x30] sm:$0xff]  ;;  %v239_v5 = vld [vmem:[#allocation2 + $0x28] sm:$0xff]  ;;  %s183_s7 = sshll.u32 %s373_s5, 4  ;;  %s184_s7 = int_to_ptr.hbm [resolvable:$true] %s183_s7 }
   0x8   :  { %65 = vmatpush.bf16.msra.mxu0 %v56_v2  ;;  %v238_v6 = vld [vmem:[#allocation2 + $0x20] sm:$0xff]  ;;  %v237_v7 = vld [vmem:[#allocation2 + $0x18] sm:$0xff]  ;;  %v236_v8 = vld [vmem:[#allocation2 + $0x10] sm:$0xff]  ;;  %s318_s8 = smov 128   ;;  %s319_s9 = smov 8  }
   0x9   :  { %v235_v9 = vld [vmem:[#allocation2 + $0x8] sm:$0xff]  ;;  %v234_v10 = vld [vmem:[#allocation2] sm:$0xff] }
   0xa   :  { %v248_v12 = vld [vmem:[%s370_s2] ss:$0 sm:$0xff]  ;;  %s317_s2 = smov [#allocation5]  }
   0xb   :  { %200 = vmatmul.msk.bf16.vlgmr.msra.gmra.mxu0 %vm50_vm1, %v233_v3  ;;  %144 = vmatpush.bf16.msra.mxu1 %v240_v4  ;;  %v249_v19 = vld [vmem:[%s372_s4] ss:$0 sm:$0xff]  ;;  %s181_s4 = sshll.u32 %s317_s2, 4  ;;  %s182_s4 = int_to_ptr.vmem [resolvable:$true] %s181_s4 }
   0xf   :  { %145 = vmatpush.bf16.msra.mxu1 %v239_v5 }
  0x13   :  { %146 = vmatpush.bf16.msra.mxu1 %v238_v6 }
  0x17   :  { %147 = vmatpush.bf16.msra.mxu1 %v237_v7 }
  0x1b   :  { %148 = vmatpush.bf16.msra.mxu1 %v236_v8 }
  0x1f   :  { %149 = vmatpush.bf16.msra.mxu1 %v235_v9 }
  0x23   :  { %150 = vmatpush.bf16.msra.mxu1 %v234_v10 }
  0x88   :  { %v67_v11 = vpop.f32.mrf.mxu0 }
  0x89   :  { %v68_v13 = vadd.f32 %v248_v12, %v67_v11 }
  0x8b   :  { %250 = vtanh.f32 %v68_v13 }
  0x90   :  { %v69_v14 = vpop.f32.mrf.mxu0 }
  0x91   :  { %v70_v15 = vadd.f32 %v248_v12, %v69_v14  ;;  %v251_v16 = vpop.eup %250 }
  0x93   :  { %252 = vtanh.f32 %v70_v15 }
  0x99   :  { %v253_v17 = vpop.eup %252 }
  0x9a   :  { %v74_v18 = vpack.c.bf16 %v253_v17, %v251_v16 }
  0x9c   :  { %151 = vmatmul.bf16.vlgmr.msra.gmra.mxu1 %v74_v18 }
 0x119   :  { %v152_v20 = vpop.f32.mrf.mxu1 }
 0x11a   :  { %v153_v21 = vadd.f32 %v249_v19, %v152_v20 }
 0x11c   :  { %157 = vmax.xlane.f32.xlu0 %v153_v21 }
 0x121   :  { %v154_v22 = vpop.f32.mrf.mxu1 }
 0x122   :  { %v155_v23 = vadd.f32 %v249_v19, %v154_v22 }
 0x124   :  { %159 = vmax.xlane.f32.xlu0 %v155_v23 }
 0x18f   :  { %v158_v24 = vpop.xlane.xlu0 %157 }
 0x190   :  { %v161_v25 = vsub.f32 %v153_v21, %v158_v24 }
 0x192   :  { %v163_v26 = vmul.f32 1.442695, %v161_v25 }
 0x194   :  { %254 = vpow2.f32 %v163_v26 }
 0x197   :  { %v160_v27 = vpop.xlane.xlu0 %159 }
 0x198   :  { %v162_v28 = vsub.f32 %v155_v23, %v160_v27 }
 0x19a   :  { %v255_v29 = vpop.eup %254  ;;  %v165_v30 = vmul.f32 1.442695, %v162_v28 }
 0x19b   :  { %167 = vadd.xlane.f32.xlu1 %v255_v29 }
 0x19c   :  { %256 = vpow2.f32 %v165_v30 }
 0x1a2   :  { %v257_v31 = vpop.eup %256 }
 0x1a3   :  { %169 = vadd.xlane.f32.xlu1 %v257_v31 }
 0x20e   :  { %v168_v32 = vpop.xlane.xlu1 %167 }
 0x20f   :  { %258 = vrcp.f32 %v168_v32 }
 0x215   :  { %v259_v33 = vpop.eup %258 }
 0x216   :  { %v173_v34 = vmul.f32 %v259_v33, %v255_v29  ;;  %v170_v35 = vpop.xlane.xlu1 %169 }
 0x217   :  { %260 = vrcp.f32 %v170_v35 }
 0x218   :  { %175 = vst [vmem:[#allocation5] sm:$0xff] %v173_v34 }
 0x21d   :  { %v261_v36 = vpop.eup %260 }
 0x21e   :  { %v174_v37 = vmul.f32 %v261_v36, %v257_v31 }
 0x220   :  { %176 = vst [vmem:[#allocation5 + $0x8] sm:$0xff] %v174_v37 }
 0x221   :  { %189 = dma.vmem_to_hbm [thread:$0]  %s182_s4, 256, %s184_s7, [#allocation4], %s318_s8, %s318_s8, %s319_s9  }
 0x222   :  { %312 = dma.done.wait [#allocation4], 256  }
 0x223   :  { %313 = vsyncadd [#allocation4], 4294967040 }
 0x224   :  { %194 = vsyncpa [#allocation3], 1 }
 0x225   :  { %195 = vsyncpa [#allocation4], 1 }

</bundles_post_ra>
